<compile_context>
chip_gen: v6e
topology: v6e:2x2x1
jax: 0.10.0
libtpu: 0.0.40
codegen_flags: <defaults>
</compile_context>

<pallas_src>
import jax
import jax.numpy as jnp
from jax.experimental import pallas as pl
from jax.experimental.pallas import tpu as pltpu

_MXU_MIN_C = 128  # below this the channel mix runs on the VPU, not the MXU


def _vmem_budget():
    """(tile budget bytes, vmem_limit_bytes): generous on 128 MiB chips
    (v5e/v6e), conservative on v7x's 64 MiB VMEM and on non-TPU backends."""
    try:
        info = pltpu.get_tpu_info()
        vmem = getattr(info, "vmem_capacity_bytes", 64 << 20)
    except Exception:  # non-TPU backend / interpret mode
        vmem = 64 << 20
    if vmem >= (100 << 20):          # v5e / v6e: 128 MiB physical VMEM
        return 20 << 20, 64 << 20
    return 8 << 20, 32 << 20         # v7x-safe defaults


def _pick_tile_cols(hw, c, itemsize, use_mxu, budget_bytes):
    """Largest lane-dense (multiple-of-128) spatial tile whose working set fits
    the budget. Counts double-buffered I/O (x, z, mu, sigma in the I/O dtype +
    bf16 noise) plus in-kernel temporaries ((2C,T) f32 matmul out + bf16 x copy
    on the MXU path)."""
    io = 2 * c * (4 * itemsize + 2)          # 2 buffers * (4 arrays + noise)
    tmp = (10 * c) if use_mxu else 32
    per_col = io + tmp
    cap = max(128, (budget_bytes // per_col) // 128 * 128)
    return min(hw, cap)


# ----------------------------------------------------------------------------
# Kernels
# ----------------------------------------------------------------------------
def _vpu4d_kernel(x_ref, noise_ref, wmu_ref, wsig_ref, bmu_ref, bsig_ref,
                  z_ref, mu_ref, sigma_ref):
    """Small-C path (C < 8, HW % 128 == 0). x_ref: (C, R, 128) — each channel is
    a full-sublane (R,128) plane; weights/biases are SMEM scalars."""
    C = x_ref.shape[0]
    for co in range(C):
        x0 = x_ref[0].astype(jnp.float32)                       # (R, 128)
        mu = wmu_ref[co, 0] * x0 + bmu_ref[co]
        sg = wsig_ref[co, 0] * x0 + bsig_ref[co]
        for ci in range(1, C):
            xi = x_ref[ci].astype(jnp.float32)
            mu = mu + wmu_ref[co, ci] * xi
            sg = sg + wsig_ref[co, ci] * xi
        # NOTE: garbage in a ragged last block flows through exp(); those rows
        # are discarded by Pallas' masked writeback, so results stay correct.
        noise = noise_ref[co].astype(jnp.float32)
        z_ref[co] = (mu + jnp.exp(0.5 * sg) * noise).astype(z_ref.dtype)
        mu_ref[co] = mu.astype(mu_ref.dtype)
        sigma_ref[co] = sg.astype(sigma_ref.dtype)


def _vpu2d_kernel(x_ref, noise_ref, wmu_ref, wsig_ref, bmu_ref, bsig_ref,
                  z_ref, mu_ref, sigma_ref):
    """VPU fallback for C < 128 when the (C, rows, 128) view is unavailable.
    x_ref: (C, T); unrolled broadcast-FMA chain over input channels."""
    x = x_ref[...].astype(jnp.float32)                           # (C, T)
    C = x.shape[0]
    wmu = wmu_ref[...]
    wsig = wsig_ref[...]
    x0 = x[0:1, :]
    mu = wmu[:, 0:1] * x0 + bmu_ref[...]                         # init: ci=0 + bias
    sg = wsig[:, 0:1] * x0 + bsig_ref[...]
    for ci in range(1, C):
        xi = x[ci:ci + 1, :]                                     # (1, T)
        mu = mu + wmu[:, ci:ci + 1] * xi                         # (C,1)*(1,T)
        sg = sg + wsig[:, ci:ci + 1] * xi
    noise = noise_ref[...].astype(jnp.float32)
    z_ref[...] = (mu + jnp.exp(0.5 * sg) * noise).astype(z_ref.dtype)
    mu_ref[...] = mu.astype(mu_ref.dtype)
    sigma_ref[...] = sg.astype(sigma_ref.dtype)


def _mxu_kernel(x_ref, noise_ref, w_ref, bmu_ref, bsig_ref,
                z_ref, mu_ref, sigma_ref):
    """MXU path (C >= 128). w_ref is the pre-fused [W_mu; W_sigma] in bf16."""
    C = x_ref.shape[0]
    out = jnp.dot(w_ref[...], x_ref[...].astype(w_ref.dtype),
                  preferred_element_type=jnp.float32)            # (2C, T) f32
    mu = out[:C, :] + bmu_ref[...]
    sg = out[C:, :] + bsig_ref[...]
    noise = noise_ref[...].astype(jnp.float32)
    z_ref[...] = (mu + jnp.exp(0.5 * sg) * noise).astype(z_ref.dtype)
    mu_ref[...] = mu.astype(mu_ref.dtype)
    sigma_ref[...] = sg.astype(sigma_ref.dtype)


# ----------------------------------------------------------------------------
# Wrapper
# ----------------------------------------------------------------------------
@jax.jit
def variational_forward(x_nchw, w_mu, b_mu, w_sigma, b_sigma, key):
    """x_nchw: (N, C, H, W). Conv weights: (C, C, 1, 1), biases: (C,).
    key: jax PRNG key for the reparameterization noise.
    Returns (z [N,C,H,W], mu [N, C*H*W], sigma [N, C*H*W])."""
    N, C, H, W = x_nchw.shape
    HW = H * W
    out_dtype = x_nchw.dtype
    itemsize = jnp.dtype(out_dtype).itemsize

    budget_bytes, vmem_limit = _vmem_budget()
    use_mxu = C >= _MXU_MIN_C
    use_4d = (not use_mxu) and (C < 8) and (HW % 128 == 0)
    tile_cols = _pick_tile_cols(HW, C, itemsize, use_mxu, budget_bytes)

    # Gaussian noise streamed in as bf16 (halves its HBM cost).
    noise = jax.random.normal(key, (N, C, HW), dtype=jnp.bfloat16)

    x = x_nchw.reshape(N, C, HW)               # free NCHW view, native dtype
    wmu = w_mu.reshape(C, C).astype(jnp.float32)
    wsig = w_sigma.reshape(C, C).astype(jnp.float32)

    m = N * HW
    cost = pl.CostEstimate(
        flops=2 * 2 * m * C * C + 3 * m * C,                  # channel mixes + reparam
        transcendentals=m * C,                                # exp
        bytes_accessed=m * C * (4 * itemsize + 2) + 2 * (C * C + C) * 4,
    )
    cp = pltpu.CompilerParams(
        dimension_semantics=("parallel", "parallel"),
        vmem_limit_bytes=vmem_limit,
    )

    if use_4d:
        rows = HW // 128
        rows_cap = max(16, (tile_cols // 128) // 16 * 16)     # packed-dtype safe
        rows_tile = rows if rows <= rows_cap else rows_cap
        grid = (N, pl.cdiv(rows, rows_tile))

        x4 = x.reshape(N, C, rows, 128)                       # free view
        n4 = noise.reshape(N, C, rows, 128)
        io_spec = pl.BlockSpec((None, C, rows_tile, 128),
                               lambda n, r: (n, 0, r, 0))
        smem = pl.BlockSpec(memory_space=pltpu.MemorySpace.SMEM)

        z, mu, sigma = pl.pallas_call(
            _vpu4d_kernel,
            out_shape=(jax.ShapeDtypeStruct((N, C, rows, 128), out_dtype),) * 3,
            grid=grid,
            in_specs=[io_spec, io_spec, smem, smem, smem, smem],
            out_specs=(io_spec, io_spec, io_spec),
            compiler_params=cp,
            cost_estimate=cost,
        )(x4, n4, wmu, wsig,
          b_mu.reshape(C).astype(jnp.float32),
          b_sigma.reshape(C).astype(jnp.float32))
    else:
        grid = (N, pl.cdiv(HW, tile_cols))
        io_spec = pl.BlockSpec((None, C, tile_cols), lambda n, i: (n, 0, i))

        def full(shape):
            return pl.BlockSpec(shape, lambda n, i: (0, 0))

        bmu = b_mu.reshape(C, 1).astype(jnp.float32)
        bsig = b_sigma.reshape(C, 1).astype(jnp.float32)

        if use_mxu:
            # Pre-fused, pre-bf16 weight (resident input, zero per-step cost).
            w_fused = jnp.concatenate([wmu, wsig], axis=0).astype(jnp.bfloat16)
            z, mu, sigma = pl.pallas_call(
                _mxu_kernel,
                out_shape=(jax.ShapeDtypeStruct((N, C, HW), out_dtype),) * 3,
                grid=grid,
                in_specs=[io_spec, io_spec, full((2 * C, C)),
                          full((C, 1)), full((C, 1))],
                out_specs=(io_spec, io_spec, io_spec),
                compiler_params=cp,
                cost_estimate=cost,
            )(x, noise, w_fused, bmu, bsig)
        else:
            z, mu, sigma = pl.pallas_call(
                _vpu2d_kernel,
                out_shape=(jax.ShapeDtypeStruct((N, C, HW), out_dtype),) * 3,
                grid=grid,
                in_specs=[io_spec, io_spec, full((C, C)), full((C, C)),
                          full((C, 1)), full((C, 1))],
                out_specs=(io_spec, io_spec, io_spec),
                compiler_params=cp,
                cost_estimate=cost,
            )(x, noise, wmu, wsig, bmu, bsig)

    z = z.reshape(N, C, H, W)                 # free reshapes (NCHW row-major)
    mu_view = mu.reshape(N, C * HW)           # == NCHW tensor .view(N, -1)
    sigma_view = sigma.reshape(N, C * HW)
    return z, mu_view, sigma_view


if __name__ == "__main__":
    key = jax.random.PRNGKey(0)
    k_x, k_wm, k_bm, k_ws, k_bs, k_noise = jax.random.split(key, 6)

    N, C, H, W = 2, 4, 16, 16
    x = jax.random.normal(k_x, (N, C, H, W), dtype=jnp.float32)

    # Deterministic parameter init (Conv2d(C, C, 1) shapes, fan_in uniform bound).
    bound = 1.0 / (C ** 0.5)
    w_mu = jax.random.uniform(k_wm, (C, C, 1, 1), minval=-bound, maxval=bound,
                              dtype=jnp.float32)
    b_mu = jax.random.uniform(k_bm, (C,), minval=-bound, maxval=bound,
                              dtype=jnp.float32)
    w_sigma = jax.random.uniform(k_ws, (C, C, 1, 1), minval=-bound, maxval=bound,
                                 dtype=jnp.float32)
    b_sigma = jax.random.uniform(k_bs, (C,), minval=-bound, maxval=bound,
                                 dtype=jnp.float32)

    z, mu, sigma = variational_forward(x, w_mu, b_mu, w_sigma, b_sigma, k_noise)
    jax.block_until_ready((z, mu, sigma))

    # Shape checks (matching the PyTorch module).
    assert z.shape == (N, C, H, W)
    assert mu.shape == (N, C * H * W)
    assert sigma.shape == (N, C * H * W)

    # Deterministic parts (mu / sigma) against a plain-JAX 1x1-conv reference.
    x_flat = x.reshape(N, C, H * W)

    def mix(w, b):
        return (jnp.einsum('oc,ncs->nos', w.reshape(C, C), x_flat,
                           precision=jax.lax.Precision.HIGHEST)
                + b.reshape(1, C, 1))

    mu_want = mix(w_mu, b_mu)
    sigma_want = mix(w_sigma, b_sigma)
    assert jnp.allclose(mu, mu_want.reshape(N, -1), atol=1e-5, rtol=1e-5)
    assert jnp.allclose(sigma, sigma_want.reshape(N, -1), atol=1e-5, rtol=1e-5)

    # z uses the exact noise stream the wrapper generated from k_noise.
    noise = jax.random.normal(k_noise, (N, C, H * W), dtype=jnp.bfloat16)
    z_want = mu_want + jnp.exp(0.5 * sigma_want) * noise.astype(jnp.float32)
    assert jnp.allclose(z.reshape(N, C, H * W), z_want, atol=1e-3, rtol=1e-3)
    assert bool(jnp.isfinite(z).all())

    print("KERNEL_OK")
</pallas_src>

<mosaic_0001>
module attributes {stable_mosaic.version = 11 : i64} {
  func.func @_vpu4d_kernel(%arg0: i32, %arg1: i32, %arg2: memref<1x4x2x128xf32, #tpu.memory_space<vmem>>, %arg3: memref<1x4x2x128xbf16, #tpu.memory_space<vmem>>, %arg4: memref<4x4xf32, #tpu.memory_space<smem>>, %arg5: memref<4x4xf32, #tpu.memory_space<smem>>, %arg6: memref<4xf32, #tpu.memory_space<smem>>, %arg7: memref<4xf32, #tpu.memory_space<smem>>, %arg8: memref<1x4x2x128xf32, #tpu.memory_space<vmem>>, %arg9: memref<1x4x2x128xf32, #tpu.memory_space<vmem>>, %arg10: memref<1x4x2x128xf32, #tpu.memory_space<vmem>>) attributes {dimension_semantics = [#tpu.dimension_semantics<parallel>, #tpu.dimension_semantics<parallel>], iteration_bounds = array<i64: 2, 1>, scalar_prefetch = 0 : i64, scratch_operands = 0 : i64, tpu.core_type = #tpu.core_type<tc>, window_params = [{transform_indices = @transform_0, window_bounds = array<i64: 1, 4, 2, 128>}, {transform_indices = @transform_1, window_bounds = array<i64: 1, 4, 2, 128>}, {transform_indices = @transform_2, window_bounds = array<i64: 4, 4>}, {transform_indices = @transform_3, window_bounds = array<i64: 4, 4>}, {transform_indices = @transform_4, window_bounds = array<i64: 4>}, {transform_indices = @transform_5, window_bounds = array<i64: 4>}, {transform_indices = @transform_6, window_bounds = array<i64: 1, 4, 2, 128>}, {transform_indices = @transform_7, window_bounds = array<i64: 1, 4, 2, 128>}, {transform_indices = @transform_8, window_bounds = array<i64: 1, 4, 2, 128>}]} {
    %c0 = arith.constant 0 : index
    %c0_0 = arith.constant 0 : index
    %c0_1 = arith.constant 0 : index
    %c0_2 = arith.constant 0 : index
    %0 = vector.load %arg2[%c0, %c0_0, %c0_1, %c0_2] : memref<1x4x2x128xf32, #tpu.memory_space<vmem>>, vector<1x1x2x128xf32>
    %1 = vector.shape_cast %0 : vector<1x1x2x128xf32> to vector<2x128xf32>
    %c0_3 = arith.constant 0 : index
    %c0_4 = arith.constant 0 : index
    %2 = memref.load %arg4[%c0_3, %c0_4] : memref<4x4xf32, #tpu.memory_space<smem>>
    %3 = vector.broadcast %2 : f32 to vector<2x128xf32>
    %4 = arith.mulf %3, %1 : vector<2x128xf32>
    %c0_5 = arith.constant 0 : index
    %5 = memref.load %arg6[%c0_5] : memref<4xf32, #tpu.memory_space<smem>>
    %6 = vector.broadcast %5 : f32 to vector<2x128xf32>
    %7 = arith.addf %4, %6 : vector<2x128xf32>
    %c0_6 = arith.constant 0 : index
    %c0_7 = arith.constant 0 : index
    %8 = memref.load %arg5[%c0_6, %c0_7] : memref<4x4xf32, #tpu.memory_space<smem>>
    %9 = vector.broadcast %8 : f32 to vector<2x128xf32>
    %10 = arith.mulf %9, %1 : vector<2x128xf32>
    %c0_8 = arith.constant 0 : index
    %11 = memref.load %arg7[%c0_8] : memref<4xf32, #tpu.memory_space<smem>>
    %12 = vector.broadcast %11 : f32 to vector<2x128xf32>
    %13 = arith.addf %10, %12 : vector<2x128xf32>
    %c0_9 = arith.constant 0 : index
    %c1 = arith.constant 1 : index
    %c0_10 = arith.constant 0 : index
    %c0_11 = arith.constant 0 : index
    %14 = vector.load %arg2[%c0_9, %c1, %c0_10, %c0_11] : memref<1x4x2x128xf32, #tpu.memory_space<vmem>>, vector<1x1x2x128xf32>
    %15 = vector.shape_cast %14 : vector<1x1x2x128xf32> to vector<2x128xf32>
    %c0_12 = arith.constant 0 : index
    %c1_13 = arith.constant 1 : index
    %16 = memref.load %arg4[%c0_12, %c1_13] : memref<4x4xf32, #tpu.memory_space<smem>>
    %17 = vector.broadcast %16 : f32 to vector<2x128xf32>
    %18 = arith.mulf %17, %15 : vector<2x128xf32>
    %19 = arith.addf %7, %18 : vector<2x128xf32>
    %c0_14 = arith.constant 0 : index
    %c1_15 = arith.constant 1 : index
    %20 = memref.load %arg5[%c0_14, %c1_15] : memref<4x4xf32, #tpu.memory_space<smem>>
    %21 = vector.broadcast %20 : f32 to vector<2x128xf32>
    %22 = arith.mulf %21, %15 : vector<2x128xf32>
    %23 = arith.addf %13, %22 : vector<2x128xf32>
    %c0_16 = arith.constant 0 : index
    %c2 = arith.constant 2 : index
    %c0_17 = arith.constant 0 : index
    %c0_18 = arith.constant 0 : index
    %24 = vector.load %arg2[%c0_16, %c2, %c0_17, %c0_18] : memref<1x4x2x128xf32, #tpu.memory_space<vmem>>, vector<1x1x2x128xf32>
    %25 = vector.shape_cast %24 : vector<1x1x2x128xf32> to vector<2x128xf32>
    %c0_19 = arith.constant 0 : index
    %c2_20 = arith.constant 2 : index
    %26 = memref.load %arg4[%c0_19, %c2_20] : memref<4x4xf32, #tpu.memory_space<smem>>
    %27 = vector.broadcast %26 : f32 to vector<2x128xf32>
    %28 = arith.mulf %27, %25 : vector<2x128xf32>
    %29 = arith.addf %19, %28 : vector<2x128xf32>
    %c0_21 = arith.constant 0 : index
    %c2_22 = arith.constant 2 : index
    %30 = memref.load %arg5[%c0_21, %c2_22] : memref<4x4xf32, #tpu.memory_space<smem>>
    %31 = vector.broadcast %30 : f32 to vector<2x128xf32>
    %32 = arith.mulf %31, %25 : vector<2x128xf32>
    %33 = arith.addf %23, %32 : vector<2x128xf32>
    %c0_23 = arith.constant 0 : index
    %c3 = arith.constant 3 : index
    %c0_24 = arith.constant 0 : index
    %c0_25 = arith.constant 0 : index
    %34 = vector.load %arg2[%c0_23, %c3, %c0_24, %c0_25] : memref<1x4x2x128xf32, #tpu.memory_space<vmem>>, vector<1x1x2x128xf32>
    %35 = vector.shape_cast %34 : vector<1x1x2x128xf32> to vector<2x128xf32>
    %c0_26 = arith.constant 0 : index
    %c3_27 = arith.constant 3 : index
    %36 = memref.load %arg4[%c0_26, %c3_27] : memref<4x4xf32, #tpu.memory_space<smem>>
    %37 = vector.broadcast %36 : f32 to vector<2x128xf32>
    %38 = arith.mulf %37, %35 : vector<2x128xf32>
    %39 = arith.addf %29, %38 : vector<2x128xf32>
    %c0_28 = arith.constant 0 : index
    %c3_29 = arith.constant 3 : index
    %40 = memref.load %arg5[%c0_28, %c3_29] : memref<4x4xf32, #tpu.memory_space<smem>>
    %41 = vector.broadcast %40 : f32 to vector<2x128xf32>
    %42 = arith.mulf %41, %35 : vector<2x128xf32>
    %43 = arith.addf %33, %42 : vector<2x128xf32>
    %c0_30 = arith.constant 0 : index
    %c0_31 = arith.constant 0 : index
    %c0_32 = arith.constant 0 : index
    %c0_33 = arith.constant 0 : index
    %44 = vector.load %arg3[%c0_30, %c0_31, %c0_32, %c0_33] : memref<1x4x2x128xbf16, #tpu.memory_space<vmem>>, vector<1x1x2x128xbf16>
    %45 = vector.shape_cast %44 : vector<1x1x2x128xbf16> to vector<2x128xbf16>
    %46 = arith.extf %45 : vector<2x128xbf16> to vector<2x128xf32>
    %cst = arith.constant 5.000000e-01 : f32
    %47 = vector.broadcast %cst : f32 to vector<2x128xf32>
    %48 = arith.mulf %47, %43 : vector<2x128xf32>
    %49 = math.exp %48 : vector<2x128xf32>
    %50 = arith.mulf %49, %46 : vector<2x128xf32>
    %51 = arith.addf %39, %50 : vector<2x128xf32>
    %c0_34 = arith.constant 0 : index
    %c0_35 = arith.constant 0 : index
    %c0_36 = arith.constant 0 : index
    %c0_37 = arith.constant 0 : index
    %52 = vector.load %arg8[%c0_34, %c0_35, %c0_36, %c0_37] : memref<1x4x2x128xf32, #tpu.memory_space<vmem>>, vector<1x1x2x128xf32>
    %53 = vector.shape_cast %52 : vector<1x1x2x128xf32> to vector<2x128xf32>
    %54 = vector.shape_cast %51 : vector<2x128xf32> to vector<1x1x2x128xf32>
    tpu.vector_store %arg8[%c0_34, %c0_35, %c0_36, %c0_37], %54 {strides = array<i32>} : memref<1x4x2x128xf32, #tpu.memory_space<vmem>>, vector<1x1x2x128xf32>,
    %c0_38 = arith.constant 0 : index
    %c0_39 = arith.constant 0 : index
    %c0_40 = arith.constant 0 : index
    %c0_41 = arith.constant 0 : index
    %55 = vector.load %arg9[%c0_38, %c0_39, %c0_40, %c0_41] : memref<1x4x2x128xf32, #tpu.memory_space<vmem>>, vector<1x1x2x128xf32>
    %56 = vector.shape_cast %55 : vector<1x1x2x128xf32> to vector<2x128xf32>
    %57 = vector.shape_cast %39 : vector<2x128xf32> to vector<1x1x2x128xf32>
    tpu.vector_store %arg9[%c0_38, %c0_39, %c0_40, %c0_41], %57 {strides = array<i32>} : memref<1x4x2x128xf32, #tpu.memory_space<vmem>>, vector<1x1x2x128xf32>,
    %c0_42 = arith.constant 0 : index
    %c0_43 = arith.constant 0 : index
    %c0_44 = arith.constant 0 : index
    %c0_45 = arith.constant 0 : index
    %58 = vector.load %arg10[%c0_42, %c0_43, %c0_44, %c0_45] : memref<1x4x2x128xf32, #tpu.memory_space<vmem>>, vector<1x1x2x128xf32>
    %59 = vector.shape_cast %58 : vector<1x1x2x128xf32> to vector<2x128xf32>
    %60 = vector.shape_cast %43 : vector<2x128xf32> to vector<1x1x2x128xf32>
    tpu.vector_store %arg10[%c0_42, %c0_43, %c0_44, %c0_45], %60 {strides = array<i32>} : memref<1x4x2x128xf32, #tpu.memory_space<vmem>>, vector<1x1x2x128xf32>,
    %c0_46 = arith.constant 0 : index
    %c0_47 = arith.constant 0 : index
    %c0_48 = arith.constant 0 : index
    %c0_49 = arith.constant 0 : index
    %61 = vector.load %arg2[%c0_46, %c0_47, %c0_48, %c0_49] : memref<1x4x2x128xf32, #tpu.memory_space<vmem>>, vector<1x1x2x128xf32>
    %62 = vector.shape_cast %61 : vector<1x1x2x128xf32> to vector<2x128xf32>
    %c1_50 = arith.constant 1 : index
    %c0_51 = arith.constant 0 : index
    %63 = memref.load %arg4[%c1_50, %c0_51] : memref<4x4xf32, #tpu.memory_space<smem>>
    %64 = vector.broadcast %63 : f32 to vector<2x128xf32>
    %65 = arith.mulf %64, %62 : vector<2x128xf32>
    %c1_52 = arith.constant 1 : index
    %66 = memref.load %arg6[%c1_52] : memref<4xf32, #tpu.memory_space<smem>>
    %67 = vector.broadcast %66 : f32 to vector<2x128xf32>
    %68 = arith.addf %65, %67 : vector<2x128xf32>
    %c1_53 = arith.constant 1 : index
    %c0_54 = arith.constant 0 : index
    %69 = memref.load %arg5[%c1_53, %c0_54] : memref<4x4xf32, #tpu.memory_space<smem>>
    %70 = vector.broadcast %69 : f32 to vector<2x128xf32>
    %71 = arith.mulf %70, %62 : vector<2x128xf32>
    %c1_55 = arith.constant 1 : index
    %72 = memref.load %arg7[%c1_55] : memref<4xf32, #tpu.memory_space<smem>>
    %73 = vector.broadcast %72 : f32 to vector<2x128xf32>
    %74 = arith.addf %71, %73 : vector<2x128xf32>
    %c0_56 = arith.constant 0 : index
    %c1_57 = arith.constant 1 : index
    %c0_58 = arith.constant 0 : index
    %c0_59 = arith.constant 0 : index
    %75 = vector.load %arg2[%c0_56, %c1_57, %c0_58, %c0_59] : memref<1x4x2x128xf32, #tpu.memory_space<vmem>>, vector<1x1x2x128xf32>
    %76 = vector.shape_cast %75 : vector<1x1x2x128xf32> to vector<2x128xf32>
    %c1_60 = arith.constant 1 : index
    %c1_61 = arith.constant 1 : index
    %77 = memref.load %arg4[%c1_60, %c1_61] : memref<4x4xf32, #tpu.memory_space<smem>>
    %78 = vector.broadcast %77 : f32 to vector<2x128xf32>
    %79 = arith.mulf %78, %76 : vector<2x128xf32>
    %80 = arith.addf %68, %79 : vector<2x128xf32>
    %c1_62 = arith.constant 1 : index
    %c1_63 = arith.constant 1 : index
    %81 = memref.load %arg5[%c1_62, %c1_63] : memref<4x4xf32, #tpu.memory_space<smem>>
    %82 = vector.broadcast %81 : f32 to vector<2x128xf32>
    %83 = arith.mulf %82, %76 : vector<2x128xf32>
    %84 = arith.addf %74, %83 : vector<2x128xf32>
    %c0_64 = arith.constant 0 : index
    %c2_65 = arith.constant 2 : index
    %c0_66 = arith.constant 0 : index
    %c0_67 = arith.constant 0 : index
    %85 = vector.load %arg2[%c0_64, %c2_65, %c0_66, %c0_67] : memref<1x4x2x128xf32, #tpu.memory_space<vmem>>, vector<1x1x2x128xf32>
    %86 = vector.shape_cast %85 : vector<1x1x2x128xf32> to vector<2x128xf32>
    %c1_68 = arith.constant 1 : index
    %c2_69 = arith.constant 2 : index
    %87 = memref.load %arg4[%c1_68, %c2_69] : memref<4x4xf32, #tpu.memory_space<smem>>
    %88 = vector.broadcast %87 : f32 to vector<2x128xf32>
    %89 = arith.mulf %88, %86 : vector<2x128xf32>
    %90 = arith.addf %80, %89 : vector<2x128xf32>
    %c1_70 = arith.constant 1 : index
    %c2_71 = arith.constant 2 : index
    %91 = memref.load %arg5[%c1_70, %c2_71] : memref<4x4xf32, #tpu.memory_space<smem>>
    %92 = vector.broadcast %91 : f32 to vector<2x128xf32>
    %93 = arith.mulf %92, %86 : vector<2x128xf32>
    %94 = arith.addf %84, %93 : vector<2x128xf32>
    %c0_72 = arith.constant 0 : index
    %c3_73 = arith.constant 3 : index
    %c0_74 = arith.constant 0 : index
    %c0_75 = arith.constant 0 : index
    %95 = vector.load %arg2[%c0_72, %c3_73, %c0_74, %c0_75] : memref<1x4x2x128xf32, #tpu.memory_space<vmem>>, vector<1x1x2x128xf32>
    %96 = vector.shape_cast %95 : vector<1x1x2x128xf32> to vector<2x128xf32>
    %c1_76 = arith.constant 1 : index
    %c3_77 = arith.constant 3 : index
    %97 = memref.load %arg4[%c1_76, %c3_77] : memref<4x4xf32, #tpu.memory_space<smem>>
    %98 = vector.broadcast %97 : f32 to vector<2x128xf32>
    %99 = arith.mulf %98, %96 : vector<2x128xf32>
    %100 = arith.addf %90, %99 : vector<2x128xf32>
    %c1_78 = arith.constant 1 : index
    %c3_79 = arith.constant 3 : index
    %101 = memref.load %arg5[%c1_78, %c3_79] : memref<4x4xf32, #tpu.memory_space<smem>>
    %102 = vector.broadcast %101 : f32 to vector<2x128xf32>
    %103 = arith.mulf %102, %96 : vector<2x128xf32>
    %104 = arith.addf %94, %103 : vector<2x128xf32>
    %c0_80 = arith.constant 0 : index
    %c1_81 = arith.constant 1 : index
    %c0_82 = arith.constant 0 : index
    %c0_83 = arith.constant 0 : index
    %105 = vector.load %arg3[%c0_80, %c1_81, %c0_82, %c0_83] : memref<1x4x2x128xbf16, #tpu.memory_space<vmem>>, vector<1x1x2x128xbf16>
    %106 = vector.shape_cast %105 : vector<1x1x2x128xbf16> to vector<2x128xbf16>
    %107 = arith.extf %106 : vector<2x128xbf16> to vector<2x128xf32>
    %cst_84 = arith.constant 5.000000e-01 : f32
    %108 = vector.broadcast %cst_84 : f32 to vector<2x128xf32>
    %109 = arith.mulf %108, %104 : vector<2x128xf32>
    %110 = math.exp %109 : vector<2x128xf32>
    %111 = arith.mulf %110, %107 : vector<2x128xf32>
    %112 = arith.addf %100, %111 : vector<2x128xf32>
    %c0_85 = arith.constant 0 : index
    %c1_86 = arith.constant 1 : index
    %c0_87 = arith.constant 0 : index
    %c0_88 = arith.constant 0 : index
    %113 = vector.load %arg8[%c0_85, %c1_86, %c0_87, %c0_88] : memref<1x4x2x128xf32, #tpu.memory_space<vmem>>, vector<1x1x2x128xf32>
    %114 = vector.shape_cast %113 : vector<1x1x2x128xf32> to vector<2x128xf32>
    %115 = vector.shape_cast %112 : vector<2x128xf32> to vector<1x1x2x128xf32>
    tpu.vector_store %arg8[%c0_85, %c1_86, %c0_87, %c0_88], %115 {strides = array<i32>} : memref<1x4x2x128xf32, #tpu.memory_space<vmem>>, vector<1x1x2x128xf32>,
    %c0_89 = arith.constant 0 : index
    %c1_90 = arith.constant 1 : index
    %c0_91 = arith.constant 0 : index
    %c0_92 = arith.constant 0 : index
    %116 = vector.load %arg9[%c0_89, %c1_90, %c0_91, %c0_92] : memref<1x4x2x128xf32, #tpu.memory_space<vmem>>, vector<1x1x2x128xf32>
    %117 = vector.shape_cast %116 : vector<1x1x2x128xf32> to vector<2x128xf32>
    %118 = vector.shape_cast %100 : vector<2x128xf32> to vector<1x1x2x128xf32>
    tpu.vector_store %arg9[%c0_89, %c1_90, %c0_91, %c0_92], %118 {strides = array<i32>} : memref<1x4x2x128xf32, #tpu.memory_space<vmem>>, vector<1x1x2x128xf32>,
    %c0_93 = arith.constant 0 : index
    %c1_94 = arith.constant 1 : index
    %c0_95 = arith.constant 0 : index
    %c0_96 = arith.constant 0 : index
    %119 = vector.load %arg10[%c0_93, %c1_94, %c0_95, %c0_96] : memref<1x4x2x128xf32, #tpu.memory_space<vmem>>, vector<1x1x2x128xf32>
    %120 = vector.shape_cast %119 : vector<1x1x2x128xf32> to vector<2x128xf32>
    %121 = vector.shape_cast %104 : vector<2x128xf32> to vector<1x1x2x128xf32>
    tpu.vector_store %arg10[%c0_93, %c1_94, %c0_95, %c0_96], %121 {strides = array<i32>} : memref<1x4x2x128xf32, #tpu.memory_space<vmem>>, vector<1x1x2x128xf32>,
    %c0_97 = arith.constant 0 : index
    %c0_98 = arith.constant 0 : index
    %c0_99 = arith.constant 0 : index
    %c0_100 = arith.constant 0 : index
    %122 = vector.load %arg2[%c0_97, %c0_98, %c0_99, %c0_100] : memref<1x4x2x128xf32, #tpu.memory_space<vmem>>, vector<1x1x2x128xf32>
    %123 = vector.shape_cast %122 : vector<1x1x2x128xf32> to vector<2x128xf32>
    %c2_101 = arith.constant 2 : index
    %c0_102 = arith.constant 0 : index
    %124 = memref.load %arg4[%c2_101, %c0_102] : memref<4x4xf32, #tpu.memory_space<smem>>
    %125 = vector.broadcast %124 : f32 to vector<2x128xf32>
    %126 = arith.mulf %125, %123 : vector<2x128xf32>
    %c2_103 = arith.constant 2 : index
    %127 = memref.load %arg6[%c2_103] : memref<4xf32, #tpu.memory_space<smem>>
    %128 = vector.broadcast %127 : f32 to vector<2x128xf32>
    %129 = arith.addf %126, %128 : vector<2x128xf32>
    %c2_104 = arith.constant 2 : index
    %c0_105 = arith.constant 0 : index
    %130 = memref.load %arg5[%c2_104, %c0_105] : memref<4x4xf32, #tpu.memory_space<smem>>
    %131 = vector.broadcast %130 : f32 to vector<2x128xf32>
    %132 = arith.mulf %131, %123 : vector<2x128xf32>
    %c2_106 = arith.constant 2 : index
    %133 = memref.load %arg7[%c2_106] : memref<4xf32, #tpu.memory_space<smem>>
    %134 = vector.broadcast %133 : f32 to vector<2x128xf32>
    %135 = arith.addf %132, %134 : vector<2x128xf32>
    %c0_107 = arith.constant 0 : index
    %c1_108 = arith.constant 1 : index
    %c0_109 = arith.constant 0 : index
    %c0_110 = arith.constant 0 : index
    %136 = vector.load %arg2[%c0_107, %c1_108, %c0_109, %c0_110] : memref<1x4x2x128xf32, #tpu.memory_space<vmem>>, vector<1x1x2x128xf32>
    %137 = vector.shape_cast %136 : vector<1x1x2x128xf32> to vector<2x128xf32>
    %c2_111 = arith.constant 2 : index
    %c1_112 = arith.constant 1 : index
    %138 = memref.load %arg4[%c2_111, %c1_112] : memref<4x4xf32, #tpu.memory_space<smem>>
    %139 = vector.broadcast %138 : f32 to vector<2x128xf32>
    %140 = arith.mulf %139, %137 : vector<2x128xf32>
    %141 = arith.addf %129, %140 : vector<2x128xf32>
    %c2_113 = arith.constant 2 : index
    %c1_114 = arith.constant 1 : index
    %142 = memref.load %arg5[%c2_113, %c1_114] : memref<4x4xf32, #tpu.memory_space<smem>>
    %143 = vector.broadcast %142 : f32 to vector<2x128xf32>
    %144 = arith.mulf %143, %137 : vector<2x128xf32>
    %145 = arith.addf %135, %144 : vector<2x128xf32>
    %c0_115 = arith.constant 0 : index
    %c2_116 = arith.constant 2 : index
    %c0_117 = arith.constant 0 : index
    %c0_118 = arith.constant 0 : index
    %146 = vector.load %arg2[%c0_115, %c2_116, %c0_117, %c0_118] : memref<1x4x2x128xf32, #tpu.memory_space<vmem>>, vector<1x1x2x128xf32>
    %147 = vector.shape_cast %146 : vector<1x1x2x128xf32> to vector<2x128xf32>
    %c2_119 = arith.constant 2 : index
    %c2_120 = arith.constant 2 : index
    %148 = memref.load %arg4[%c2_119, %c2_120] : memref<4x4xf32, #tpu.memory_space<smem>>
    %149 = vector.broadcast %148 : f32 to vector<2x128xf32>
    %150 = arith.mulf %149, %147 : vector<2x128xf32>
    %151 = arith.addf %141, %150 : vector<2x128xf32>
    %c2_121 = arith.constant 2 : index
    %c2_122 = arith.constant 2 : index
    %152 = memref.load %arg5[%c2_121, %c2_122] : memref<4x4xf32, #tpu.memory_space<smem>>
    %153 = vector.broadcast %152 : f32 to vector<2x128xf32>
    %154 = arith.mulf %153, %147 : vector<2x128xf32>
    %155 = arith.addf %145, %154 : vector<2x128xf32>
    %c0_123 = arith.constant 0 : index
    %c3_124 = arith.constant 3 : index
    %c0_125 = arith.constant 0 : index
    %c0_126 = arith.constant 0 : index
    %156 = vector.load %arg2[%c0_123, %c3_124, %c0_125, %c0_126] : memref<1x4x2x128xf32, #tpu.memory_space<vmem>>, vector<1x1x2x128xf32>
    %157 = vector.shape_cast %156 : vector<1x1x2x128xf32> to vector<2x128xf32>
    %c2_127 = arith.constant 2 : index
    %c3_128 = arith.constant 3 : index
    %158 = memref.load %arg4[%c2_127, %c3_128] : memref<4x4xf32, #tpu.memory_space<smem>>
    %159 = vector.broadcast %158 : f32 to vector<2x128xf32>
    %160 = arith.mulf %159, %157 : vector<2x128xf32>
    %161 = arith.addf %151, %160 : vector<2x128xf32>
    %c2_129 = arith.constant 2 : index
    %c3_130 = arith.constant 3 : index
    %162 = memref.load %arg5[%c2_129, %c3_130] : memref<4x4xf32, #tpu.memory_space<smem>>
    %163 = vector.broadcast %162 : f32 to vector<2x128xf32>
    %164 = arith.mulf %163, %157 : vector<2x128xf32>
    %165 = arith.addf %155, %164 : vector<2x128xf32>
    %c0_131 = arith.constant 0 : index
    %c2_132 = arith.constant 2 : index
    %c0_133 = arith.constant 0 : index
    %c0_134 = arith.constant 0 : index
    %166 = vector.load %arg3[%c0_131, %c2_132, %c0_133, %c0_134] : memref<1x4x2x128xbf16, #tpu.memory_space<vmem>>, vector<1x1x2x128xbf16>
    %167 = vector.shape_cast %166 : vector<1x1x2x128xbf16> to vector<2x128xbf16>
    %168 = arith.extf %167 : vector<2x128xbf16> to vector<2x128xf32>
    %cst_135 = arith.constant 5.000000e-01 : f32
    %169 = vector.broadcast %cst_135 : f32 to vector<2x128xf32>
    %170 = arith.mulf %169, %165 : vector<2x128xf32>
    %171 = math.exp %170 : vector<2x128xf32>
    %172 = arith.mulf %171, %168 : vector<2x128xf32>
    %173 = arith.addf %161, %172 : vector<2x128xf32>
    %c0_136 = arith.constant 0 : index
    %c2_137 = arith.constant 2 : index
    %c0_138 = arith.constant 0 : index
    %c0_139 = arith.constant 0 : index
    %174 = vector.load %arg8[%c0_136, %c2_137, %c0_138, %c0_139] : memref<1x4x2x128xf32, #tpu.memory_space<vmem>>, vector<1x1x2x128xf32>
    %175 = vector.shape_cast %174 : vector<1x1x2x128xf32> to vector<2x128xf32>
    %176 = vector.shape_cast %173 : vector<2x128xf32> to vector<1x1x2x128xf32>
    tpu.vector_store %arg8[%c0_136, %c2_137, %c0_138, %c0_139], %176 {strides = array<i32>} : memref<1x4x2x128xf32, #tpu.memory_space<vmem>>, vector<1x1x2x128xf32>,
    %c0_140 = arith.constant 0 : index
    %c2_141 = arith.constant 2 : index
    %c0_142 = arith.constant 0 : index
    %c0_143 = arith.constant 0 : index
    %177 = vector.load %arg9[%c0_140, %c2_141, %c0_142, %c0_143] : memref<1x4x2x128xf32, #tpu.memory_space<vmem>>, vector<1x1x2x128xf32>
    %178 = vector.shape_cast %177 : vector<1x1x2x128xf32> to vector<2x128xf32>
    %179 = vector.shape_cast %161 : vector<2x128xf32> to vector<1x1x2x128xf32>
    tpu.vector_store %arg9[%c0_140, %c2_141, %c0_142, %c0_143], %179 {strides = array<i32>} : memref<1x4x2x128xf32, #tpu.memory_space<vmem>>, vector<1x1x2x128xf32>,
    %c0_144 = arith.constant 0 : index
    %c2_145 = arith.constant 2 : index
    %c0_146 = arith.constant 0 : index
    %c0_147 = arith.constant 0 : index
    %180 = vector.load %arg10[%c0_144, %c2_145, %c0_146, %c0_147] : memref<1x4x2x128xf32, #tpu.memory_space<vmem>>, vector<1x1x2x128xf32>
    %181 = vector.shape_cast %180 : vector<1x1x2x128xf32> to vector<2x128xf32>
    %182 = vector.shape_cast %165 : vector<2x128xf32> to vector<1x1x2x128xf32>
    tpu.vector_store %arg10[%c0_144, %c2_145, %c0_146, %c0_147], %182 {strides = array<i32>} : memref<1x4x2x128xf32, #tpu.memory_space<vmem>>, vector<1x1x2x128xf32>,
    %c0_148 = arith.constant 0 : index
    %c0_149 = arith.constant 0 : index
    %c0_150 = arith.constant 0 : index
    %c0_151 = arith.constant 0 : index
    %183 = vector.load %arg2[%c0_148, %c0_149, %c0_150, %c0_151] : memref<1x4x2x128xf32, #tpu.memory_space<vmem>>, vector<1x1x2x128xf32>
    %184 = vector.shape_cast %183 : vector<1x1x2x128xf32> to vector<2x128xf32>
    %c3_152 = arith.constant 3 : index
    %c0_153 = arith.constant 0 : index
    %185 = memref.load %arg4[%c3_152, %c0_153] : memref<4x4xf32, #tpu.memory_space<smem>>
    %186 = vector.broadcast %185 : f32 to vector<2x128xf32>
    %187 = arith.mulf %186, %184 : vector<2x128xf32>
    %c3_154 = arith.constant 3 : index
    %188 = memref.load %arg6[%c3_154] : memref<4xf32, #tpu.memory_space<smem>>
    %189 = vector.broadcast %188 : f32 to vector<2x128xf32>
    %190 = arith.addf %187, %189 : vector<2x128xf32>
    %c3_155 = arith.constant 3 : index
    %c0_156 = arith.constant 0 : index
    %191 = memref.load %arg5[%c3_155, %c0_156] : memref<4x4xf32, #tpu.memory_space<smem>>
    %192 = vector.broadcast %191 : f32 to vector<2x128xf32>
    %193 = arith.mulf %192, %184 : vector<2x128xf32>
    %c3_157 = arith.constant 3 : index
    %194 = memref.load %arg7[%c3_157] : memref<4xf32, #tpu.memory_space<smem>>
    %195 = vector.broadcast %194 : f32 to vector<2x128xf32>
    %196 = arith.addf %193, %195 : vector<2x128xf32>
    %c0_158 = arith.constant 0 : index
    %c1_159 = arith.constant 1 : index
    %c0_160 = arith.constant 0 : index
    %c0_161 = arith.constant 0 : index
    %197 = vector.load %arg2[%c0_158, %c1_159, %c0_160, %c0_161] : memref<1x4x2x128xf32, #tpu.memory_space<vmem>>, vector<1x1x2x128xf32>
    %198 = vector.shape_cast %197 : vector<1x1x2x128xf32> to vector<2x128xf32>
    %c3_162 = arith.constant 3 : index
    %c1_163 = arith.constant 1 : index
    %199 = memref.load %arg4[%c3_162, %c1_163] : memref<4x4xf32, #tpu.memory_space<smem>>
    %200 = vector.broadcast %199 : f32 to vector<2x128xf32>
    %201 = arith.mulf %200, %198 : vector<2x128xf32>
    %202 = arith.addf %190, %201 : vector<2x128xf32>
    %c3_164 = arith.constant 3 : index
    %c1_165 = arith.constant 1 : index
    %203 = memref.load %arg5[%c3_164, %c1_165] : memref<4x4xf32, #tpu.memory_space<smem>>
    %204 = vector.broadcast %203 : f32 to vector<2x128xf32>
    %205 = arith.mulf %204, %198 : vector<2x128xf32>
    %206 = arith.addf %196, %205 : vector<2x128xf32>
    %c0_166 = arith.constant 0 : index
    %c2_167 = arith.constant 2 : index
    %c0_168 = arith.constant 0 : index
    %c0_169 = arith.constant 0 : index
    %207 = vector.load %arg2[%c0_166, %c2_167, %c0_168, %c0_169] : memref<1x4x2x128xf32, #tpu.memory_space<vmem>>, vector<1x1x2x128xf32>
    %208 = vector.shape_cast %207 : vector<1x1x2x128xf32> to vector<2x128xf32>
    %c3_170 = arith.constant 3 : index
    %c2_171 = arith.constant 2 : index
    %209 = memref.load %arg4[%c3_170, %c2_171] : memref<4x4xf32, #tpu.memory_space<smem>>
    %210 = vector.broadcast %209 : f32 to vector<2x128xf32>
    %211 = arith.mulf %210, %208 : vector<2x128xf32>
    %212 = arith.addf %202, %211 : vector<2x128xf32>
    %c3_172 = arith.constant 3 : index
    %c2_173 = arith.constant 2 : index
    %213 = memref.load %arg5[%c3_172, %c2_173] : memref<4x4xf32, #tpu.memory_space<smem>>
    %214 = vector.broadcast %213 : f32 to vector<2x128xf32>
    %215 = arith.mulf %214, %208 : vector<2x128xf32>
    %216 = arith.addf %206, %215 : vector<2x128xf32>
    %c0_174 = arith.constant 0 : index
    %c3_175 = arith.constant 3 : index
    %c0_176 = arith.constant 0 : index
    %c0_177 = arith.constant 0 : index
    %217 = vector.load %arg2[%c0_174, %c3_175, %c0_176, %c0_177] : memref<1x4x2x128xf32, #tpu.memory_space<vmem>>, vector<1x1x2x128xf32>
    %218 = vector.shape_cast %217 : vector<1x1x2x128xf32> to vector<2x128xf32>
    %c3_178 = arith.constant 3 : index
    %c3_179 = arith.constant 3 : index
    %219 = memref.load %arg4[%c3_178, %c3_179] : memref<4x4xf32, #tpu.memory_space<smem>>
    %220 = vector.broadcast %219 : f32 to vector<2x128xf32>
    %221 = arith.mulf %220, %218 : vector<2x128xf32>
    %222 = arith.addf %212, %221 : vector<2x128xf32>
    %c3_180 = arith.constant 3 : index
    %c3_181 = arith.constant 3 : index
    %223 = memref.load %arg5[%c3_180, %c3_181] : memref<4x4xf32, #tpu.memory_space<smem>>
    %224 = vector.broadcast %223 : f32 to vector<2x128xf32>
    %225 = arith.mulf %224, %218 : vector<2x128xf32>
    %226 = arith.addf %216, %225 : vector<2x128xf32>
    %c0_182 = arith.constant 0 : index
    %c3_183 = arith.constant 3 : index
    %c0_184 = arith.constant 0 : index
    %c0_185 = arith.constant 0 : index
    %227 = vector.load %arg3[%c0_182, %c3_183, %c0_184, %c0_185] : memref<1x4x2x128xbf16, #tpu.memory_space<vmem>>, vector<1x1x2x128xbf16>
    %228 = vector.shape_cast %227 : vector<1x1x2x128xbf16> to vector<2x128xbf16>
    %229 = arith.extf %228 : vector<2x128xbf16> to vector<2x128xf32>
    %cst_186 = arith.constant 5.000000e-01 : f32
    %230 = vector.broadcast %cst_186 : f32 to vector<2x128xf32>
    %231 = arith.mulf %230, %226 : vector<2x128xf32>
    %232 = math.exp %231 : vector<2x128xf32>
    %233 = arith.mulf %232, %229 : vector<2x128xf32>
    %234 = arith.addf %222, %233 : vector<2x128xf32>
    %c0_187 = arith.constant 0 : index
    %c3_188 = arith.constant 3 : index
    %c0_189 = arith.constant 0 : index
    %c0_190 = arith.constant 0 : index
    %235 = vector.load %arg8[%c0_187, %c3_188, %c0_189, %c0_190] : memref<1x4x2x128xf32, #tpu.memory_space<vmem>>, vector<1x1x2x128xf32>
    %236 = vector.shape_cast %235 : vector<1x1x2x128xf32> to vector<2x128xf32>
    %237 = vector.shape_cast %234 : vector<2x128xf32> to vector<1x1x2x128xf32>
    tpu.vector_store %arg8[%c0_187, %c3_188, %c0_189, %c0_190], %237 {strides = array<i32>} : memref<1x4x2x128xf32, #tpu.memory_space<vmem>>, vector<1x1x2x128xf32>,
    %c0_191 = arith.constant 0 : index
    %c3_192 = arith.constant 3 : index
    %c0_193 = arith.constant 0 : index
    %c0_194 = arith.constant 0 : index
    %238 = vector.load %arg9[%c0_191, %c3_192, %c0_193, %c0_194] : memref<1x4x2x128xf32, #tpu.memory_space<vmem>>, vector<1x1x2x128xf32>
    %239 = vector.shape_cast %238 : vector<1x1x2x128xf32> to vector<2x128xf32>
    %240 = vector.shape_cast %222 : vector<2x128xf32> to vector<1x1x2x128xf32>
    tpu.vector_store %arg9[%c0_191, %c3_192, %c0_193, %c0_194], %240 {strides = array<i32>} : memref<1x4x2x128xf32, #tpu.memory_space<vmem>>, vector<1x1x2x128xf32>,
    %c0_195 = arith.constant 0 : index
    %c3_196 = arith.constant 3 : index
    %c0_197 = arith.constant 0 : index
    %c0_198 = arith.constant 0 : index
    %241 = vector.load %arg10[%c0_195, %c3_196, %c0_197, %c0_198] : memref<1x4x2x128xf32, #tpu.memory_space<vmem>>, vector<1x1x2x128xf32>
    %242 = vector.shape_cast %241 : vector<1x1x2x128xf32> to vector<2x128xf32>
    %243 = vector.shape_cast %226 : vector<2x128xf32> to vector<1x1x2x128xf32>
    tpu.vector_store %arg10[%c0_195, %c3_196, %c0_197, %c0_198], %243 {strides = array<i32>} : memref<1x4x2x128xf32, #tpu.memory_space<vmem>>, vector<1x1x2x128xf32>,
    return
  }
  func.func @transform_0(%arg0: i32, %arg1: i32) -> (i32, i32, i32, i32) {
    %c0_i32 = arith.constant 0 : i32
    %c0_i32_0 = arith.constant 0 : i32
    %c0_i32_1 = arith.constant 0 : i32
    return %arg0, %c0_i32, %arg1, %c0_i32_0 : i32, i32, i32, i32
  }
  func.func @transform_1(%arg0: i32, %arg1: i32) -> (i32, i32, i32, i32) {
    %c0_i32 = arith.constant 0 : i32
    %c0_i32_0 = arith.constant 0 : i32
    %c0_i32_1 = arith.constant 0 : i32
    return %arg0, %c0_i32, %arg1, %c0_i32_0 : i32, i32, i32, i32
  }
  func.func @transform_2(%arg0: i32, %arg1: i32) -> (i32, i32) {
    %c0_i32 = arith.constant 0 : i32
    %c0_i32_0 = arith.constant 0 : i32
    %c0_i32_1 = arith.constant 0 : i32
    return %c0_i32, %c0_i32_0 : i32, i32
  }
  func.func @transform_3(%arg0: i32, %arg1: i32) -> (i32, i32) {
    %c0_i32 = arith.constant 0 : i32
    %c0_i32_0 = arith.constant 0 : i32
    %c0_i32_1 = arith.constant 0 : i32
    return %c0_i32, %c0_i32_0 : i32, i32
  }
  func.func @transform_4(%arg0: i32, %arg1: i32) -> i32 {
    %c0_i32 = arith.constant 0 : i32
    %c0_i32_0 = arith.constant 0 : i32
    return %c0_i32 : i32
  }
  func.func @transform_5(%arg0: i32, %arg1: i32) -> i32 {
    %c0_i32 = arith.constant 0 : i32
    %c0_i32_0 = arith.constant 0 : i32
    return %c0_i32 : i32
  }
  func.func @transform_6(%arg0: i32, %arg1: i32) -> (i32, i32, i32, i32) {
    %c0_i32 = arith.constant 0 : i32
    %c0_i32_0 = arith.constant 0 : i32
    %c0_i32_1 = arith.constant 0 : i32
    return %arg0, %c0_i32, %arg1, %c0_i32_0 : i32, i32, i32, i32
  }
  func.func @transform_7(%arg0: i32, %arg1: i32) -> (i32, i32, i32, i32) {
    %c0_i32 = arith.constant 0 : i32
    %c0_i32_0 = arith.constant 0 : i32
    %c0_i32_1 = arith.constant 0 : i32
    return %arg0, %c0_i32, %arg1, %c0_i32_0 : i32, i32, i32, i32
  }
  func.func @transform_8(%arg0: i32, %arg1: i32) -> (i32, i32, i32, i32) {
    %c0_i32 = arith.constant 0 : i32
    %c0_i32_0 = arith.constant 0 : i32
    %c0_i32_1 = arith.constant 0 : i32
    return %arg0, %c0_i32, %arg1, %c0_i32_0 : i32, i32, i32, i32
  }
}

</mosaic_0001>

<bundles_post_ra>
// kernel: variational_forward.1
= control target key start
LH: loop header
LB: loop body
LE: loop exit
PB: predicated region body
PF: predicated region fallthrough
CT: control target
= control target key end

     0   :  { %14 = vsyncpa [#allocation3], 0  ;;  %s1462_s0 = inlined_call_operand.vmem [shape: f32[2,4,2,128], index: 0, kind: input, shape index: {}]   ;;  %s1463_s1 = inlined_call_operand.vmem [shape: bf16[2,4,2,128], index: 1, kind: input, shape index: {}]   ;;  %s1464_s2 = inlined_call_operand.vmem [shape: f32[4,4], index: 2, kind: input, shape index: {}]   ;;  %s1465_s3 = inlined_call_operand.vmem [shape: f32[4,4], index: 3, kind: input, shape index: {}]   ;;  %s1466_s4 = inlined_call_operand.vmem [shape: f32[4], index: 4, kind: input, shape index: {}]   ;;  %s1467_s5 = inlined_call_operand.vmem [shape: f32[4], index: 5, kind: input, shape index: {}]   ;;  %s1468_s6 = inlined_call_operand.vmem [shape: f32[2,4,2,128], index: 6, kind: output, shape index: {0}]   ;;  %s1469_s7 = inlined_call_operand.vmem [shape: f32[2,4,2,128], index: 7, kind: output, shape index: {1}]   ;;  %s1470_s8 = inlined_call_operand.vmem [shape: f32[2,4,2,128], index: 8, kind: output, shape index: {2}]  }
   0x1   :  { %15 = vsyncpa [#allocation5], 0 }
   0x2   :  { %16 = vsyncpa [#allocation8], 0  ;;  %s1213_s27 = smov 0   ;;  %s1215_s28 = smov 0  }
   0x3   :  { %s1217_s29 = smov 0  }
   0x4 LB: > { %s287_s10 = sshll.u32 %s1465_s3, 4  ;;  %s907_s11 = sadd.s32 4294967295, %s1162_s29   ;;  %s1162_s29 = sphi %s1217_s29, %s22_s29   ;;  %s1158_s28 = sphi %s1215_s28, %s1481_s28   ;;  %s1154_s27 = sphi %s1213_s27, %s1480_s27   ;;  %s288_s10 = int_to_ptr.vmem [resolvable:$true] %s287_s10 }
   0x5   : > { %p909_p0 = scmp.ge.s32.totalorder %s1162_s29, 1  ;;  %p263_p1 = scmp.lt.s32.totalorder %s1162_s29, 3 }
   0x6   : > { %p1234_p2 = scmp.eq.s32.totalorder %s907_s11, 0  ;;  %s34_s14 = sadd.s32 1, %s1158_s28 }
   0x7   : > { %p1238_p3 = pnand %p909_p0, %p263_p1  ;;  %s276_s17 = sshll.u32 %s1464_s2, 4  ;;  %s277_s17 = int_to_ptr.vmem [resolvable:$true] %s276_s17 }
   0x8   : > { %s1474_s12 = scalar_select %p1234_p2, 1, 0 }
   0x9   : > { %s1475_s13 = scalar_select %p1238_p3, 1, 0 }
   0xa   : > { %p1011_p4 = pneg %p1238_p3  ;;  %p1254_p6 = scmp.ge.s32.totalorder %s34_s14, 2 }
   0xb   : > { %s298_s22 = sshll.u32 %s1466_s4, 4  ;;  %s1068_s23 = scalar_lea.vmem %s288_s10, 64  ;;  %s299_s22 = int_to_ptr.vmem [resolvable:$true] %s298_s22 }
   0xc   : > { %p1250_p5 = pnand %p1234_p2, %p1011_p4  ;;  %p1069_p7 = scmp.ne.s32.totalorder %s288_s10, %s1068_s23 }
   0xd   : > { %p1076_p11 = scmp.lt.s32.totalorder %s288_s10, %s288_s10  ;;  %p1077_p12 = scmp.lt.s32.totalorder %s1068_s23, %s1068_s23 }
   0xe   : > { %p1070_p8 = pneg %p1250_p5 }
   0xf   : > { %p1078_p13 = por %p1077_p12, %p1076_p11 }
  0x10   : > { %p1071_p9 = pnand %p1070_p8, %p1069_p7 }
  0x12   : > { %p1072_p10 = pneg %p1071_p9 }
  0x14   : > { %p1079_p0 = pnand %p1078_p13, %p1072_p10 }
  0x16   : > { %1082 = shalt.err (!%p1079_p0)
}
  0x17   : > { %s1164_s24 = smov [#allocation4]   ;;  %s1483_s14 = smov (%p1254_p6, %s34_s14), 0 }
  0x18   : > { %1017 = dma.vmem_to_smem (!%p1250_p5), %s288_s10, 64, %s1164_s24, [#allocation5]  }
  0x19   : > { %s1083_s25 = scalar_lea.vmem %s277_s17, 64  ;;  %p1091_p9 = scmp.lt.s32.totalorder %s277_s17, %s277_s17 }
  0x1a   : > { %p1084_p1 = scmp.ne.s32.totalorder %s277_s17, %s1083_s25  ;;  %p1092_p2 = scmp.lt.s32.totalorder %s1083_s25, %s1083_s25 }
  0x1c   : > { %p1086_p4 = pnand %p1084_p1, %p1070_p8  ;;  %p1093_p11 = por %p1092_p2, %p1091_p9 }
  0x1e   : > { %p1087_p7 = pneg %p1086_p4 }
  0x20   : > { %p1094_p10 = pnand %p1093_p11, %p1087_p7 }
  0x22   : > { %1097 = shalt.err (!%p1094_p10)
}
  0x23   : > { %s1165_s26 = smov [#allocation2]   ;;  %s1098_s30 = scalar_lea.vmem %s299_s22, 16 }
  0x24   : > { %1014 = dma.vmem_to_smem (!%p1250_p5), %s277_s17, 64, %s1165_s26, [#allocation3]  }
  0x25   : > { %p1099_p6 = scmp.ne.s32.totalorder %s299_s22, %s1098_s30  ;;  %p1106_p0 = scmp.lt.s32.totalorder %s299_s22, %s299_s22 }
  0x26   : > { %p1107_p1 = scmp.lt.s32.totalorder %s1098_s30, %s1098_s30 }
  0x27   : > { %p1101_p12 = pnand %p1099_p6, %p1070_p8 }
  0x28   : > { %p1108_p4 = por %p1107_p1, %p1106_p0 }
  0x29   : > { %p1102_p13 = pneg %p1101_p12 }
  0x2b   : > { %p1109_p3 = pnand %p1108_p4, %p1102_p13 }
  0x2d   : > { %1112 = shalt.err (!%p1109_p3)
}
  0x2e   : > { %s1166_s9 = smov [#allocation6]   ;;  %s309_s15 = sshll.u32 %s1467_s5, 4  ;;  %s310_s15 = int_to_ptr.vmem [resolvable:$true] %s309_s15 }
  0x2f   : > { %1020 = dma.vmem_to_smem (!%p1250_p5), %s299_s22, 16, %s1166_s9, [#allocation5]  }
  0x30   : > { %s1113_s16 = scalar_lea.vmem %s310_s15, 16  ;;  %p1121_p11 = scmp.lt.s32.totalorder %s310_s15, %s310_s15 }
  0x31   : > { %p1114_p2 = scmp.ne.s32.totalorder %s310_s15, %s1113_s16  ;;  %p1122_p10 = scmp.lt.s32.totalorder %s1113_s16, %s1113_s16 }
  0x33   : > { %p1116_p7 = pnand %p1114_p2, %p1070_p8  ;;  %p1123_p6 = por %p1122_p10, %p1121_p11 }
  0x35   : > { %p1117_p9 = pneg %p1116_p7 }
  0x37   : > { %p1124_p3 = pnand %p1123_p6, %p1117_p9 }
  0x39   : > { %1127 = shalt.err (!%p1124_p3)
}
  0x3a   : > { %s1167_s17 = smov [#allocation7]   ;;  %p1478_p12 = scmp.ne.s32.totalorder %s1475_s13, 0 }
  0x3b   : > { %1023 = dma.vmem_to_smem (!%p1250_p5), %s310_s15, 16, %s1167_s17, [#allocation8]  }
  0x3c   : > { %343 = sbr.rel (%p1478_p12) target bundleno = 145 (0x91), region = 44  ;;  %p1479_p13 = scmp.ne.s32.totalorder (!%p1478_p12), %s1474_s12, 0 }
  0x41   : > { %1141 = dma.done.wait (%p1479_p13), [#allocation3], 64  }
  0x42   : > { %1143 = vsyncadd (%p1479_p13), [#allocation3], 4294967232 }
  0x43   : > { %1145 = dma.done.wait (%p1479_p13), [#allocation5], 80  }
  0x44   : > { %1147 = vsyncadd (%p1479_p13), [#allocation5], 4294967216 }
  0x45   : > { %1149 = dma.done.wait (%p1479_p13), [#allocation8], 16  }
  0x46   : > { %1151 = vsyncadd (%p1479_p13), [#allocation8], 4294967280 }
  0x47   : > { %361 = sfence }
  0x48   : > { %p419_p5 = scmp.lt.s32.totalorder %s1154_s27, 1  ;;  %s459_s13 = sld [smem:[#allocation2]] }
  0x49   : > { %s462_s18 = sld [smem:[#allocation6]] }
  0x4a   : > { %s1485_s27 = smov (!%p419_p5, %s1154_s27), 1  ;;  %s465_s19 = sld [smem:[#allocation4]] }
  0x4b   : > { %s1309_s20 = sshll.u32 %s1485_s27, 3  ;;  %s468_s12 = sld [smem:[#allocation7]] }
  0x4c   : > { %s1315_s23 = scalar_lea.vmem %s1462_s0, %s1309_s20  ;;  %s930_s24 = sld [smem:[#allocation2 + $0x1]] }
  0x4d   : > { %v458_v1 = vld [vmem:[%s1315_s23] sm:$0x3]  ;;  %s931_s25 = sld [smem:[#allocation4 + $0x1]]  ;;  %v929_v8 = vld [vmem:[%s1315_s23 + $0x2] sm:$0x3]  ;;  %s1333_s22 = scalar_lea.vmem %s1469_s7, %s1309_s20 }
  0x4e   : > { %v460_v0 = vstv %s459_s13  ;;  %s933_s26 = sld [smem:[#allocation2 + $0x2]]  ;;  %v932_v13 = vld [vmem:[%s1315_s23 + $0x4] sm:$0x3]  ;;  %v935_v19 = vld [vmem:[%s1315_s23 + $0x6] sm:$0x3] }
  0x4f   : > { %v461_v2 = vmul.f32 %v460_v0, %v458_v1  ;;  %v463_v3 = vstv %s462_s18  ;;  %s934_s30 = sld [smem:[#allocation4 + $0x2]]  ;;  %v511_v28 = vld [vmem:[%s1315_s23] sm:$0x3]  ;;  %v942_v38 = vld [vmem:[%s1315_s23 + $0x2] sm:$0x3] }
  0x50   : > { %v466_v4 = vstv %s465_s19  ;;  %s936_s9 = sld [smem:[#allocation2 + $0x3]]  ;;  %v945_v44 = vld [vmem:[%s1315_s23 + $0x4] sm:$0x3]  ;;  %v948_v51 = vld [vmem:[%s1315_s23 + $0x6] sm:$0x3] }
  0x51   : > { %v467_v5 = vmul.f32 %v466_v4, %v458_v1  ;;  %v464_v6 = vadd.f32 %v463_v3, %v461_v2  ;;  %v469_v7 = vstv %s468_s12  ;;  %s937_s10 = sld [smem:[#allocation4 + $0x3]]  ;;  %v565_v60 = vld [vmem:[%s1315_s23] sm:$0x3] }
  0x52   : > { %v474_v10 = vstv %s930_s24  ;;  %s1319_s11 = sld [smem:[#allocation2 + $0x80]] }
  0x53   : > { %v470_v9 = vadd.f32 %v469_v7, %v467_v5  ;;  %v475_v11 = vmul.f32 %v929_v8, %v474_v10  ;;  %v478_v12 = vstv %s931_s25  ;;  %s1322_s15 = sld [smem:[#allocation6 + $0x1]] }
  0x54   : > { %v479_v14 = vmul.f32 %v929_v8, %v478_v12  ;;  %v484_v15 = vstv %s933_s26  ;;  %s940_s16 = sld [smem:[#allocation4 + $0x80]]  ;;  %s1343_s26 = scalar_lea.vmem %s1470_s8, %s1309_s20 }
  0x55   : > { %v476_v16 = vadd.f32 %v475_v11, %v464_v6  ;;  %v485_v17 = vmul.f32 %v932_v13, %v484_v15  ;;  %v488_v18 = vstv %s934_s30  ;;  %s1325_s17 = sld [smem:[#allocation7 + $0x1]]  ;;  %v959_v6 = vld [vmem:[%s1315_s23 + $0x2] sm:$0x3] }
  0x56   : > { %v480_v20 = vadd.f32 %v479_v14, %v470_v9  ;;  %v489_v21 = vmul.f32 %v932_v13, %v488_v18  ;;  %v494_v22 = vstv %s936_s9  ;;  %s943_s13 = sld [smem:[#allocation2 + $0x81]]  ;;  %v962_v13 = vld [vmem:[%s1315_s23 + $0x4] sm:$0x3] }
  0x57   : > { %v486_v23 = vadd.f32 %v485_v17, %v476_v16  ;;  %v495_v24 = vmul.f32 %v935_v19, %v494_v22  ;;  %v498_v25 = vstv %s937_s10  ;;  %s1327_s18 = sld [smem:[#allocation4 + $0x81]] }
  0x58   : > { %v490_v26 = vadd.f32 %v489_v21, %v480_v20  ;;  %v499_v27 = vmul.f32 %v935_v19, %v498_v25  ;;  %v513_v29 = vstv %s1319_s11  ;;  %s946_s12 = sld [smem:[#allocation2 + $0x82]]  ;;  %v965_v21 = vld [vmem:[%s1315_s23 + $0x6] sm:$0x3] }
  0x59   : > { %v1337_v30 = vadd.f32 %v495_v24, %v486_v23  ;;  %v514_v31 = vmul.f32 %v513_v29, %v511_v28  ;;  %v516_v32 = vstv %s1322_s15  ;;  %s1346_s30 = sld [smem:[#allocation4 + $0x82]] }
  0x5a   : > { %v500_v33 = vadd.f32 %v499_v27, %v490_v26  ;;  %v519_v34 = vstv %s940_s16  ;;  %s1348_s9 = sld [smem:[#allocation2 + $0x83]] }
  0x5b   : > { %509 = vst [vmem:[%s1333_s22] sm:$0x3] %v1337_v30  ;;  %v517_v35 = vadd.f32 %v516_v32, %v514_v31  ;;  %v520_v36 = vmul.f32 %v519_v34, %v511_v28  ;;  %v522_v37 = vstv %s1325_s17  ;;  %s950_s10 = sld [smem:[#allocation4 + $0x83]]  ;;  %v619_v31 = vld [vmem:[%s1315_s23] sm:$0x3] }
  0x5c   : > { %v503_v39 = vmul.f32 0.5, %v500_v33  ;;  %510 = vst [vmem:[%s1343_s26] sm:$0x3] %v500_v33  ;;  %v526_v40 = vstv %s943_s13  ;;  %s1355_s11 = sld [smem:[#allocation2 + $0x100]]  ;;  %s922_s13 = sshll.u32 %s1485_s27, 2 }
  0x5d   : > { %v523_v41 = vadd.f32 %v522_v37, %v520_v36  ;;  %v527_v42 = vmul.f32 %v942_v38, %v526_v40  ;;  %v530_v43 = vstv %s1327_s18  ;;  %s1359_s15 = sld [smem:[#allocation6 + $0x2]]  ;;  %s1378_s24 = scalar_lea.vmem %s1463_s1, %s922_s13 }
  0x5e   : > { %v504_v45 = vmul.f32 1.442695, %v503_v39  ;;  %v531_v46 = vmul.f32 %v942_v38, %v530_v43  ;;  %v535_v47 = vstv %s946_s12  ;;  %s1361_s16 = sld [smem:[#allocation4 + $0x100]]  ;;  %v501_v7 = vld [vmem:[%s1378_s24] sm:$0x1] }
  0x5f   : > { %v528_v48 = vadd.f32 %v527_v42, %v517_v35  ;;  %v536_v49 = vmul.f32 %v945_v44, %v535_v47  ;;  %v539_v50 = vstv %s1346_s30  ;;  %s1365_s17 = sld [smem:[#allocation7 + $0x2]]  ;;  %v502_v17 = vunpack.c.l.bf16 %v501_v7  ;;  %v976_v43 = vld [vmem:[%s1315_s23 + $0x2] sm:$0x3] }
  0x60   : > { %1060 = vpow2.f32 %v504_v45  ;;  %v532_v52 = vadd.f32 %v531_v46, %v523_v41  ;;  %v540_v53 = vmul.f32 %v945_v44, %v539_v50  ;;  %v544_v54 = vstv %s1348_s9  ;;  %s960_s18 = sld [smem:[#allocation2 + $0x101]]  ;;  %v951_v45 = vld [vmem:[%s1378_s24 + $0x1] sm:$0x1] }
  0x61   : > { %v537_v55 = vadd.f32 %v536_v49, %v528_v48  ;;  %v545_v56 = vmul.f32 %v948_v51, %v544_v54  ;;  %v548_v57 = vstv %s950_s10  ;;  %s1369_s19 = sld [smem:[#allocation4 + $0x101]] }
  0x62   : > { %v541_v58 = vadd.f32 %v540_v53, %v532_v52  ;;  %v549_v59 = vmul.f32 %v948_v51, %v548_v57  ;;  %v567_v61 = vstv %s1355_s11  ;;  %s1373_s27 = sld [smem:[#allocation2 + $0x102]]  ;;  %v979_v51 = vld [vmem:[%s1315_s23 + $0x4] sm:$0x3] }
  0x63   : > { %v1380_v62 = vadd.f32 %v545_v56, %v537_v55  ;;  %v568_v63 = vmul.f32 %v567_v61, %v565_v60  ;;  %v570_v0 = vstv %s1359_s15  ;;  %s1383_s25 = sld [smem:[#allocation4 + $0x102]]  ;;  %v553_v55 = vunpack.c.l.bf16 %v951_v45 }
  0x64   : > { %v550_v1 = vadd.f32 %v549_v59, %v541_v58  ;;  %v573_v2 = vstv %s1361_s16  ;;  %s1386_s30 = sld [smem:[#allocation2 + $0x103]]  ;;  %v982_v58 = vld [vmem:[%s1315_s23 + $0x6] sm:$0x3] }
  0x65   : > { %953 = vst [vmem:[%s1333_s22 + $0x2] sm:$0x3] %v1380_v62  ;;  %v571_v3 = vadd.f32 %v570_v0, %v568_v63  ;;  %v574_v4 = vmul.f32 %v573_v2, %v565_v60  ;;  %v576_v5 = vstv %s1365_s17  ;;  %s1392_s9 = sld [smem:[#allocation4 + $0x103]] }
  0x66   : > { %v554_v8 = vmul.f32 0.5, %v550_v1  ;;  %954 = vst [vmem:[%s1343_s26 + $0x2] sm:$0x3] %v550_v1  ;;  %v580_v9 = vstv %s960_s18  ;;  %s1396_s10 = sld [smem:[#allocation2 + $0x180]] }
  0x67   : > { %v577_v10 = vadd.f32 %v576_v5, %v574_v4  ;;  %v581_v11 = vmul.f32 %v959_v6, %v580_v9  ;;  %v584_v12 = vstv %s1369_s19  ;;  %s1400_s11 = sld [smem:[#allocation6 + $0x3]] }
  0x68   : > { %v555_v14 = vmul.f32 1.442695, %v554_v8  ;;  %v585_v15 = vmul.f32 %v959_v6, %v584_v12  ;;  %v589_v16 = vstv %s1373_s27  ;;  %s1403_s15 = sld [smem:[#allocation4 + $0x180]] }
  0x69   : > { %v582_v18 = vadd.f32 %v581_v11, %v571_v3  ;;  %v590_v19 = vmul.f32 %v962_v13, %v589_v16  ;;  %v593_v20 = vstv %s1383_s25  ;;  %s1407_s16 = sld [smem:[#allocation7 + $0x3]]  ;;  %s1429_s25 = scalar_lea.vmem %s1468_s6, %s1309_s20  ;;  %v985_v16 = vld [vmem:[%s1378_s24 + $0x3] sm:$0x1] }
  0x6a   : > { %1062 = vpow2.f32 %v555_v14  ;;  %v586_v22 = vadd.f32 %v585_v15, %v577_v10  ;;  %v594_v23 = vmul.f32 %v962_v13, %v593_v20  ;;  %v598_v24 = vstv %s1386_s30  ;;  %s1410_s17 = sld [smem:[#allocation2 + $0x181]]  ;;  %v968_v10 = vld [vmem:[%s1378_s24 + $0x2] sm:$0x1] }
  0x6b   : > { %v591_v25 = vadd.f32 %v590_v19, %v582_v18  ;;  %v599_v26 = vmul.f32 %v965_v21, %v598_v24  ;;  %v602_v27 = vstv %s1392_s9  ;;  %s1413_s13 = sld [smem:[#allocation4 + $0x181]]  ;;  %v607_v12 = vunpack.c.l.bf16 %v968_v10 }
  0x6c   : > { %v595_v28 = vadd.f32 %v594_v23, %v586_v22  ;;  %v603_v29 = vmul.f32 %v965_v21, %v602_v27  ;;  %v621_v32 = vstv %s1396_s10  ;;  %s1417_s18 = sld [smem:[#allocation2 + $0x182]] }
  0x6d   : > { %v1061_v33 = vpop.eup %1060  ;;  %v600_v34 = vadd.f32 %v599_v26, %v591_v25  ;;  %v622_v35 = vmul.f32 %v621_v32, %v619_v31  ;;  %v624_v36 = vstv %s1400_s11  ;;  %s1420_s19 = sld [smem:[#allocation4 + $0x182]] }
  0x6e   : > { %v506_v37 = vmul.f32 %v1061_v33, %v502_v17  ;;  %v604_v38 = vadd.f32 %v603_v29, %v595_v28  ;;  %v627_v39 = vstv %s1403_s15  ;;  %s1423_s27 = sld [smem:[#allocation2 + $0x183]]  ;;  %v661_v17 = vunpack.c.l.bf16 %v985_v16 }
  0x6f   : > { %970 = vst [vmem:[%s1333_s22 + $0x4] sm:$0x3] %v600_v34  ;;  %v625_v40 = vadd.f32 %v624_v36, %v622_v35  ;;  %v628_v41 = vmul.f32 %v627_v39, %v619_v31  ;;  %v630_v42 = vstv %s1407_s16  ;;  %s984_s30 = sld [smem:[#allocation4 + $0x183]] }
  0x70   : > { %v507_v44 = vadd.f32 %v506_v37, %v1337_v30  ;;  %v608_v46 = vmul.f32 0.5, %v604_v38  ;;  %971 = vst [vmem:[%s1343_s26 + $0x4] sm:$0x3] %v604_v38  ;;  %v634_v47 = vstv %s1410_s17 }
  0x71   : > { %v631_v48 = vadd.f32 %v630_v42, %v628_v41  ;;  %v635_v49 = vmul.f32 %v976_v43, %v634_v47  ;;  %v638_v50 = vstv %s1413_s13 }
  0x72   : > { %508 = vst [vmem:[%s1429_s25] sm:$0x3] %v507_v44  ;;  %v609_v52 = vmul.f32 1.442695, %v608_v46  ;;  %v639_v53 = vmul.f32 %v976_v43, %v638_v50  ;;  %v643_v54 = vstv %s1417_s18 }
  0x73   : > { %v636_v56 = vadd.f32 %v635_v49, %v625_v40  ;;  %v644_v57 = vmul.f32 %v979_v51, %v643_v54  ;;  %v647_v30 = vstv %s1420_s19 }
  0x74   : > { %1064 = vpow2.f32 %v609_v52  ;;  %v640_v59 = vadd.f32 %v639_v53, %v631_v48  ;;  %v648_v60 = vmul.f32 %v979_v51, %v647_v30  ;;  %v652_v61 = vstv %s1423_s27 }
  0x75   : > { %v645_v63 = vadd.f32 %v644_v57, %v636_v56  ;;  %v653_v0 = vmul.f32 %v982_v58, %v652_v61  ;;  %v656_v1 = vstv %s984_s30 }
  0x76   : > { %v649_v2 = vadd.f32 %v648_v60, %v640_v59  ;;  %v657_v3 = vmul.f32 %v982_v58, %v656_v1 }
  0x77   : > { %v1063_v4 = vpop.eup %1062  ;;  %v654_v5 = vadd.f32 %v653_v0, %v645_v63 }
  0x78   : > { %v557_v6 = vmul.f32 %v1063_v4, %v553_v55  ;;  %v658_v7 = vadd.f32 %v657_v3, %v649_v2 }
  0x79   : > { %987 = vst [vmem:[%s1333_s22 + $0x6] sm:$0x3] %v654_v5 }
  0x7a   : > { %v558_v8 = vadd.f32 %v557_v6, %v1380_v62  ;;  %v662_v9 = vmul.f32 0.5, %v658_v7  ;;  %988 = vst [vmem:[%s1343_s26 + $0x6] sm:$0x3] %v658_v7 }
  0x7c   : > { %952 = vst [vmem:[%s1429_s25 + $0x2] sm:$0x3] %v558_v8  ;;  %v663_v11 = vmul.f32 1.442695, %v662_v9 }
  0x7e   : > { %1066 = vpow2.f32 %v663_v11 }
  0x81   : > { %v1065_v13 = vpop.eup %1064 }
  0x82   : > { %v611_v14 = vmul.f32 %v1065_v13, %v607_v12 }
  0x84   : > { %v612_v15 = vadd.f32 %v611_v14, %v600_v34 }
  0x86   : > { %969 = vst [vmem:[%s1429_s25 + $0x4] sm:$0x3] %v612_v15 }
  0x8b   : > { %v1067_v18 = vpop.eup %1066 }
  0x8c   : > { %v665_v19 = vmul.f32 %v1067_v18, %v661_v17 }
  0x8e   : > { %v666_v20 = vadd.f32 %v665_v19, %v654_v5 }
  0x90   : > { %986 = vst [vmem:[%s1429_s25 + $0x6] sm:$0x3] %v666_v20 }
  0x91 PF: > { %s22_s29 = sadd.s32 1, %s1162_s29   ;;  %s1480_s27 = smov %s1158_s28 }
  0x92   : > { %p19_p8 = scmp.ge.s32.totalorder %s22_s29, 4   ;;  %s1481_s28 = smov %s1483_s14 }
  0x94   :  { %21 = sbr.rel (!%p19_p8) target bundleno = 4 (0x4), region = 133 }
  0x99   :  { %744 = vsyncpa [#allocation3], 1 }
  0x9a   :  { %746 = vsyncpa [#allocation3 + $0x1], 1 }
  0x9b   :  { %747 = vsyncpa [#allocation5], 1 }
  0x9c   :  { %748 = vsyncpa [#allocation8], 1 }

</bundles_post_ra>
